<compile_context>
chip_gen: v7x
topology: tpu7x:2x2x1
jax: 0.10.0
libtpu: 0.0.40
codegen_flags: <defaults>
</compile_context>

<pallas_src>
import numpy as np
import jax
import jax.numpy as jnp
from jax import lax
from jax.experimental import pallas as pl
from jax.experimental.pallas import tpu as pltpu

# ----------------------------- "args" config -------------------------------
BS, TS = 2, 2
N_ENTITIES = 8                        # entities per batch element
ENTITY_DIM = 16                       # input_shape
N_AGENTS = 3                          # args.n_agents
EMBED_DIM = 256                       # attn_embed_dim == elect_attn_embed_dim
N_HEADS = 2                           # args.attn_n_heads
HEAD_DIM = EMBED_DIM // N_HEADS       # 128 -> lane-aligned head slices
HIDDEN_DIM = 32                       # args.elect_hidden_dim

INV_SQRT_HD = float(1.0 / np.sqrt(HEAD_DIM))


# ------------------------------- kernel ------------------------------------
def _elector_kernel(ents_ref, emcol_ref, emrowb_ref, cross_ref,
                    w_ent_ref, b_ent_ref, w_qkv_ref,
                    w_out_ref, b_out_ref,
                    w1_ref, b1_ref, w2_ref, b2_ref,
                    out_ref):
    ents = ents_ref[...]                         # (R, ed)  bf16
    em_c = emcol_ref[...]                        # (R, 1)   f32, 1 == masked row
    # additive softmax bias: block-diagonal cross mask + column entity mask
    bias = cross_ref[...] + emrowb_ref[0]        # (R, R)   f32

    # x1 = relu(entity_fc(entities)) for all TB*ne rows at once
    x1 = jnp.maximum(
        jnp.dot(ents, w_ent_ref[...], preferred_element_type=jnp.float32)
        + b_ent_ref[...], 0.0)                   # (R, D) f32

    # fused Q|K|V projection (1/sqrt(head_dim) already folded into the Q weights);
    # single bf16 cast of the whole qkv block instead of six per-head slice casts.
    qkv = jnp.dot(x1.astype(jnp.bfloat16), w_qkv_ref[...],
                  preferred_element_type=jnp.float32).astype(jnp.bfloat16)   # (R, 3D)

    heads = []
    for h in range(N_HEADS):                     # static loop: 2 full-size MXU pairs
        s0 = h * HEAD_DIM
        qh = qkv[:, s0:s0 + HEAD_DIM]
        kh = qkv[:, EMBED_DIM + s0:EMBED_DIM + s0 + HEAD_DIM]
        vh = qkv[:, 2 * EMBED_DIM + s0:2 * EMBED_DIM + s0 + HEAD_DIM]
        # q @ k^T.  TODO(synk): check bundle dump for an explicit XLU transpose of
        # kh here; if present, produce K pre-transposed to relieve the XLU slot.
        logits = lax.dot_general(qh, kh, (((1,), (1,)), ((), ())),
                                 preferred_element_type=jnp.float32)         # (R, R)
        neg = logits + bias
        m = jnp.max(neg, axis=-1, keepdims=True)
        e = jnp.exp(neg - m)                     # masked columns -> exactly 0
        ssum = jnp.sum(e, axis=-1, keepdims=True)            # >= 1 for rows we keep
        attn_w = e * pl.reciprocal(ssum, approx=True)        # EUP, not a VALU divide
        head_out = jnp.dot(attn_w.astype(jnp.bfloat16), vh,
                           preferred_element_type=jnp.float32)               # (R, hd)
        heads.append(head_out.astype(jnp.bfloat16))

    head_cat = jnp.concatenate(heads, axis=-1)                               # (R, D)
    attn_out = jnp.dot(head_cat, w_out_ref[...],
                       preferred_element_type=jnp.float32) + b_out_ref[...]

    # post mask: rows with em_c == 1 (masked agents / padded rows) zeroed here.
    # NOTE: uses the row's *entity* mask; it equals the agent mask on agent rows
    # and only differs on non-agent rows, which the wrapper slices away.
    post = em_c > 0.5
    attn_out = jnp.where(post, 0.0, attn_out)    # NaN/garbage-safe select

    hidden = jnp.maximum(
        jnp.dot(attn_out.astype(jnp.bfloat16), w1_ref[...],
                preferred_element_type=jnp.float32) + b1_ref[...], 0.0)      # (R, H1)
    # fc2 (32 -> 1): VPU multiply + lane reduce instead of an N=1 MXU op
    logit = jnp.sum(hidden * w2_ref[...], axis=-1, keepdims=True) + b2_ref[0, 0]
    prob = jax.nn.sigmoid(logit)                                             # (R, 1)
    prob = jnp.where(post, 0.0, prob)            # masked_fill(agent_mask, 0)
    out_ref[...] = prob


# ------------------------------- wrapper ------------------------------------
def elector_agent_pallas(entities, entity_mask, params, tb_max=16):
    bs, ts, ne, ed = entities.shape
    assert ne == N_ENTITIES and ed == ENTITY_DIM
    B = bs * ts
    # Adaptive block-batch: ensure nb >= 2 whenever B >= 2 so v7x can shard the
    # "parallel" axis across both TensorCores; cap at tb_max (TB=16 fills the
    # 128-sublane MXU on v5e; sweep TB=32 on the 256-wide MXUs of v6e/v7x).
    tb = max(1, min(tb_max, -(-B // 2)))
    R = tb * ne
    nb = -(-B // tb)
    B_pad = nb * tb

    ents = entities.reshape(B, ne, ed).astype(jnp.float32)
    em = entity_mask.reshape(B, ne).astype(jnp.float32)
    if B_pad != B:
        ents = jnp.concatenate(
            [ents, jnp.zeros((B_pad - B, ne, ed), jnp.float32)], axis=0)
        em = jnp.concatenate(
            [em, jnp.ones((B_pad - B, ne), jnp.float32)], axis=0)   # pad = fully masked

    ents_flat = ents.reshape(B_pad * ne, ed).astype(jnp.bfloat16)    # (B_pad*ne, ed)
    em_col = em.reshape(B_pad * ne, 1)                               # (B_pad*ne, 1)
    em_row_bias = em.reshape(nb, 1, R) * (-1e30)                     # additive col mask

    # grid-invariant block-diagonal additive bias (-1e30 across batch elements)
    blk = np.arange(R) // ne
    cross_bias = jnp.asarray(
        np.where(blk[:, None] != blk[None, :], -1e30, 0.0).astype(np.float32))  # (R, R)

    bf = jnp.bfloat16
    w_ent = params["w_ent"].astype(bf)
    # fold 1/sqrt(head_dim) into the Q weights (one-time wrapper-side weight scale)
    w_qkv = jnp.concatenate(
        [params["w_q"] * INV_SQRT_HD, params["w_k"], params["w_v"]],
        axis=1).astype(bf)                                           # (D, 3D)
    w_out = params["w_out"].astype(bf)
    w1 = params["w1"].astype(bf)
    w2_row = params["w2"].reshape(1, HIDDEN_DIM).astype(jnp.float32)
    b2 = params["b2"].reshape(1, 1).astype(jnp.float32)

    const2 = lambda i: (0, 0)
    in_specs = [
        pl.BlockSpec((R, ed), lambda i: (i, 0)),
        pl.BlockSpec((R, 1), lambda i: (i, 0)),
        pl.BlockSpec((1, 1, R), lambda i: (i, 0, 0)),
        pl.BlockSpec((R, R), const2),                     # cross-block bias (resident)
        pl.BlockSpec((ed, EMBED_DIM), const2),
        pl.BlockSpec((1, EMBED_DIM), const2),
        pl.BlockSpec((EMBED_DIM, 3 * EMBED_DIM), const2),
        pl.BlockSpec((EMBED_DIM, EMBED_DIM), const2),
        pl.BlockSpec((1, EMBED_DIM), const2),
        pl.BlockSpec((EMBED_DIM, HIDDEN_DIM), const2),
        pl.BlockSpec((1, HIDDEN_DIM), const2),
        pl.BlockSpec((1, HIDDEN_DIM), const2),
        pl.BlockSpec(memory_space=pltpu.MemorySpace.SMEM),   # b2 scalar
    ]
    out_spec = pl.BlockSpec((R, 1), lambda i: (i, 0))

    probs_flat = pl.pallas_call(
        _elector_kernel,
        out_shape=jax.ShapeDtypeStruct((B_pad * ne, 1), jnp.float32),
        grid_spec=pltpu.PrefetchScalarGridSpec(
            num_scalar_prefetch=0, grid=(nb,),
            in_specs=in_specs, out_specs=out_spec),
        compiler_params=pltpu.CompilerParams(
            dimension_semantics=("parallel",)),   # disjoint output blocks -> safe
    )(ents_flat, em_col, em_row_bias, cross_bias,
      w_ent, params["b_ent"], w_qkv,
      w_out, params["b_out"],
      w1, params["b1"], w2_row, b2)

    probs = probs_flat.reshape(B_pad, ne)[:B, :N_AGENTS]
    return probs.reshape(bs, ts, N_AGENTS)


# --------------------------- pure-JAX reference ------------------------------
# Mirrors the kernel's mixed precision (bf16 MXU inputs, f32 accumulation,
# f32 softmax/sigmoid) so the comparison is apples-to-apples.
def elector_agent_ref(entities, entity_mask, params):
    bs, ts, ne, ed = entities.shape
    B = bs * ts
    bf, f32 = jnp.bfloat16, jnp.float32

    def mm(a, b):
        return jnp.matmul(a.astype(bf), b.astype(bf), preferred_element_type=f32)

    x = entities.reshape(B, ne, ed).astype(f32)
    em = entity_mask.reshape(B, ne).astype(f32)
    am = em[:, :N_AGENTS]
    x1 = jax.nn.relu(mm(x, params["w_ent"]) + params["b_ent"])
    q = mm(x1, params["w_q"])[:, :N_AGENTS]
    k = mm(x1, params["w_k"])
    v = mm(x1, params["w_v"])
    pre = 1.0 - (1.0 - am)[:, :, None] * (1.0 - em)[:, None, :]
    maskb = pre > 0.5
    qh = q.reshape(B, N_AGENTS, N_HEADS, HEAD_DIM)
    kh = k.reshape(B, ne, N_HEADS, HEAD_DIM)
    vh = v.reshape(B, ne, N_HEADS, HEAD_DIM)
    logits = jnp.einsum("bqhd,bkhd->bhqk", qh.astype(bf), kh.astype(bf),
                        preferred_element_type=f32) * INV_SQRT_HD
    neg = jnp.where(maskb[:, None], -1e30, logits)
    m = jnp.max(neg, -1, keepdims=True)
    e = jnp.exp(neg - m) * (1.0 - pre)[:, None]
    s = jnp.sum(e, -1, keepdims=True)
    w = jnp.where(s > 0, e / jnp.where(s > 0, s, 1.0), 0.0)
    ho = jnp.einsum("bhqk,bkhd->bqhd", w.astype(bf), vh.astype(bf),
                    preferred_element_type=f32).reshape(B, N_AGENTS, EMBED_DIM)
    attn_out = mm(ho, params["w_out"]) + params["b_out"]
    post = am[:, :, None] > 0.5
    attn_out = jnp.where(post, 0.0, attn_out)
    hidden = jax.nn.relu(mm(attn_out, params["w1"]) + params["b1"])
    logit = jnp.sum(hidden * params["w2"].reshape(1, 1, HIDDEN_DIM),
                    axis=-1, keepdims=True) + params["b2"]
    prob = jax.nn.sigmoid(logit)
    prob = jnp.where(post, 0.0, prob)
    return prob.reshape(bs, ts, N_AGENTS)


# ------------------------------- params -------------------------------------
def init_params(key):
    ks = jax.random.split(key, 10)
    w = lambda k, shape, s=0.1: jax.random.normal(k, shape, jnp.float32) * s
    return dict(
        w_ent=w(ks[0], (ENTITY_DIM, EMBED_DIM)),
        b_ent=w(ks[1], (1, EMBED_DIM), 0.01),
        w_q=w(ks[2], (EMBED_DIM, EMBED_DIM)),
        w_k=w(ks[3], (EMBED_DIM, EMBED_DIM)),
        w_v=w(ks[4], (EMBED_DIM, EMBED_DIM)),
        w_out=w(ks[5], (EMBED_DIM, EMBED_DIM)),
        b_out=w(ks[6], (1, EMBED_DIM), 0.01),
        w1=w(ks[7], (EMBED_DIM, HIDDEN_DIM)),
        b1=w(ks[8], (1, HIDDEN_DIM), 0.01),
        w2=w(ks[9], (HIDDEN_DIM, 1)),
        b2=jnp.zeros((1, 1), jnp.float32),
    )


if __name__ == "__main__":
    key = jax.random.PRNGKey(0)
    kp, ke, km = jax.random.split(key, 3)
    params = init_params(kp)
    entities = jax.random.normal(ke, (BS, TS, N_ENTITIES, ENTITY_DIM), jnp.float32)
    entity_mask = (jax.random.uniform(km, (BS, TS, N_ENTITIES)) < 0.3).astype(jnp.float32)

    probs = jax.block_until_ready(elector_agent_pallas(entities, entity_mask, params))
    ref = elector_agent_ref(entities, entity_mask, params)
    np.testing.assert_allclose(np.asarray(probs), np.asarray(ref), rtol=5e-3, atol=5e-3)

    # TODO(synk): torch.distributions.Bernoulli has no Pallas equivalent; the
    # kernel returns dist.probs (the filtered sigmoid output) instead.
    print("KERNEL_OK")
</pallas_src>

<mosaic_0001>
module attributes {stable_mosaic.version = 11 : i64} {
  func.func @_elector_kernel(%arg0: i32, %arg1: memref<16x16xbf16, #tpu.memory_space<vmem>>, %arg2: memref<16x1xf32, #tpu.memory_space<vmem>>, %arg3: memref<1x1x16xf32, #tpu.memory_space<vmem>>, %arg4: memref<16x16xf32, #tpu.memory_space<vmem>>, %arg5: memref<16x256xbf16, #tpu.memory_space<vmem>>, %arg6: memref<1x256xf32, #tpu.memory_space<vmem>>, %arg7: memref<256x768xbf16, #tpu.memory_space<vmem>>, %arg8: memref<256x256xbf16, #tpu.memory_space<vmem>>, %arg9: memref<1x256xf32, #tpu.memory_space<vmem>>, %arg10: memref<256x32xbf16, #tpu.memory_space<vmem>>, %arg11: memref<1x32xf32, #tpu.memory_space<vmem>>, %arg12: memref<1x32xf32, #tpu.memory_space<vmem>>, %arg13: memref<1x1xf32, #tpu.memory_space<smem>>, %arg14: memref<16x1xf32, #tpu.memory_space<vmem>>) attributes {dimension_semantics = [#tpu.dimension_semantics<parallel>], iteration_bounds = array<i64: 2>, scalar_prefetch = 0 : i64, scratch_operands = 0 : i64, tpu.core_type = #tpu.core_type<tc>, window_params = [{transform_indices = @transform_0, window_bounds = array<i64: 16, 16>}, {transform_indices = @transform_1, window_bounds = array<i64: 16, 1>}, {transform_indices = @transform_2, window_bounds = array<i64: 1, 1, 16>}, {pipeline_mode = #tpu.pipeline_mode<synchronous>, transform_indices = @transform_3, window_bounds = array<i64: 16, 16>}, {pipeline_mode = #tpu.pipeline_mode<synchronous>, transform_indices = @transform_4, window_bounds = array<i64: 16, 256>}, {pipeline_mode = #tpu.pipeline_mode<synchronous>, transform_indices = @transform_5, window_bounds = array<i64: 1, 256>}, {pipeline_mode = #tpu.pipeline_mode<synchronous>, transform_indices = @transform_6, window_bounds = array<i64: 256, 768>}, {pipeline_mode = #tpu.pipeline_mode<synchronous>, transform_indices = @transform_7, window_bounds = array<i64: 256, 256>}, {pipeline_mode = #tpu.pipeline_mode<synchronous>, transform_indices = @transform_8, window_bounds = array<i64: 1, 256>}, {pipeline_mode = #tpu.pipeline_mode<synchronous>, transform_indices = @transform_9, window_bounds = array<i64: 256, 32>}, {pipeline_mode = #tpu.pipeline_mode<synchronous>, transform_indices = @transform_10, window_bounds = array<i64: 1, 32>}, {pipeline_mode = #tpu.pipeline_mode<synchronous>, transform_indices = @transform_11, window_bounds = array<i64: 1, 32>}, {transform_indices = @transform_12, window_bounds = array<i64: 1, 1>}, {transform_indices = @transform_13, window_bounds = array<i64: 16, 1>}]} {
    %c0 = arith.constant 0 : index
    %c0_0 = arith.constant 0 : index
    %0 = vector.load %arg1[%c0, %c0_0] : memref<16x16xbf16, #tpu.memory_space<vmem>>, vector<16x16xbf16>
    %c0_1 = arith.constant 0 : index
    %c0_2 = arith.constant 0 : index
    %1 = vector.load %arg2[%c0_1, %c0_2] : memref<16x1xf32, #tpu.memory_space<vmem>>, vector<16x1xf32>
    %c0_3 = arith.constant 0 : index
    %c0_4 = arith.constant 0 : index
    %2 = vector.load %arg4[%c0_3, %c0_4] : memref<16x16xf32, #tpu.memory_space<vmem>>, vector<16x16xf32>
    %c0_5 = arith.constant 0 : index
    %c0_6 = arith.constant 0 : index
    %c0_7 = arith.constant 0 : index
    %3 = vector.load %arg3[%c0_5, %c0_6, %c0_7] : memref<1x1x16xf32, #tpu.memory_space<vmem>>, vector<1x1x16xf32>
    %4 = vector.shape_cast %3 : vector<1x1x16xf32> to vector<1x16xf32>
    %5 = vector.broadcast %4 : vector<1x16xf32> to vector<16x16xf32>
    %6 = arith.addf %2, %5 : vector<16x16xf32>
    %c0_8 = arith.constant 0 : index
    %c0_9 = arith.constant 0 : index
    %7 = vector.load %arg5[%c0_8, %c0_9] : memref<16x256xbf16, #tpu.memory_space<vmem>>, vector<16x256xbf16>
    %cst = arith.constant dense<0.000000e+00> : vector<16x256xf32>
    %8 = tpu.matmul %0, %7, %cst {dimension_numbers = #tpu.dot_dimension_numbers<[1], [0], [0], [1], [0, 0, 1, 1], [], []>} : vector<16x16xbf16>, vector<16x256xbf16>, vector<16x256xf32> -> vector<16x256xf32>
    %c0_10 = arith.constant 0 : index
    %c0_11 = arith.constant 0 : index
    %9 = vector.load %arg6[%c0_10, %c0_11] : memref<1x256xf32, #tpu.memory_space<vmem>>, vector<1x256xf32>
    %10 = vector.broadcast %9 : vector<1x256xf32> to vector<16x256xf32>
    %11 = arith.addf %8, %10 : vector<16x256xf32>
    %cst_12 = arith.constant 0.000000e+00 : f32
    %12 = vector.broadcast %cst_12 : f32 to vector<16x256xf32>
    %13 = arith.maximumf %11, %12 : vector<16x256xf32>
    %14 = arith.truncf %13 : vector<16x256xf32> to vector<16x256xbf16>
    %c0_13 = arith.constant 0 : index
    %c0_14 = arith.constant 0 : index
    %15 = vector.load %arg7[%c0_13, %c0_14] : memref<256x768xbf16, #tpu.memory_space<vmem>>, vector<256x768xbf16>
    %cst_15 = arith.constant dense<0.000000e+00> : vector<16x768xf32>
    %16 = tpu.matmul %14, %15, %cst_15 {dimension_numbers = #tpu.dot_dimension_numbers<[1], [0], [0], [1], [0, 0, 1, 1], [], []>} : vector<16x256xbf16>, vector<256x768xbf16>, vector<16x768xf32> -> vector<16x768xf32>
    %17 = arith.truncf %16 : vector<16x768xf32> to vector<16x768xbf16>
    %18 = vector.extract_strided_slice %17 {offsets = [0, 0], sizes = [16, 128], strides = [1, 1]} : vector<16x768xbf16> to vector<16x128xbf16>
    %19 = vector.extract_strided_slice %17 {offsets = [0, 256], sizes = [16, 128], strides = [1, 1]} : vector<16x768xbf16> to vector<16x128xbf16>
    %20 = vector.extract_strided_slice %17 {offsets = [0, 512], sizes = [16, 128], strides = [1, 1]} : vector<16x768xbf16> to vector<16x128xbf16>
    %cst_16 = arith.constant dense<0.000000e+00> : vector<16x16xf32>
    %21 = tpu.matmul %18, %19, %cst_16 {dimension_numbers = #tpu.dot_dimension_numbers<[1], [1], [0], [0], [0, 0, 1, 0], [], []>} : vector<16x128xbf16>, vector<16x128xbf16>, vector<16x16xf32> -> vector<16x16xf32>
    %22 = arith.addf %21, %6 : vector<16x16xf32>
    %cst_17 = arith.constant dense<0xFF800000> : vector<16xf32>
    %23 = vector.multi_reduction <maximumf>, %22, %cst_17 [1] : vector<16x16xf32> to vector<16xf32>
    %24 = vector.shape_cast %23 : vector<16xf32> to vector<16x1xf32>
    %25 = vector.broadcast %24 : vector<16x1xf32> to vector<16x16xf32>
    %26 = arith.subf %22, %25 : vector<16x16xf32>
    %27 = math.exp %26 : vector<16x16xf32>
    %cst_18 = arith.constant dense<0.000000e+00> : vector<16xf32>
    %28 = vector.multi_reduction <add>, %27, %cst_18 [1] : vector<16x16xf32> to vector<16xf32>
    %29 = vector.shape_cast %28 : vector<16xf32> to vector<16x1xf32>
    %30 = tpu.reciprocal %29 {approx = true} : vector<16x1xf32> -> vector<16x1xf32>
    %31 = vector.broadcast %30 : vector<16x1xf32> to vector<16x16xf32>
    %32 = arith.mulf %27, %31 : vector<16x16xf32>
    %33 = arith.truncf %32 : vector<16x16xf32> to vector<16x16xbf16>
    %cst_19 = arith.constant dense<0.000000e+00> : vector<16x128xf32>
    %34 = tpu.matmul %33, %20, %cst_19 {dimension_numbers = #tpu.dot_dimension_numbers<[1], [0], [0], [1], [0, 0, 1, 1], [], []>} : vector<16x16xbf16>, vector<16x128xbf16>, vector<16x128xf32> -> vector<16x128xf32>
    %35 = arith.truncf %34 : vector<16x128xf32> to vector<16x128xbf16>
    %36 = vector.extract_strided_slice %17 {offsets = [0, 128], sizes = [16, 128], strides = [1, 1]} : vector<16x768xbf16> to vector<16x128xbf16>
    %37 = vector.extract_strided_slice %17 {offsets = [0, 384], sizes = [16, 128], strides = [1, 1]} : vector<16x768xbf16> to vector<16x128xbf16>
    %38 = vector.extract_strided_slice %17 {offsets = [0, 640], sizes = [16, 128], strides = [1, 1]} : vector<16x768xbf16> to vector<16x128xbf16>
    %cst_20 = arith.constant dense<0.000000e+00> : vector<16x16xf32>
    %39 = tpu.matmul %36, %37, %cst_20 {dimension_numbers = #tpu.dot_dimension_numbers<[1], [1], [0], [0], [0, 0, 1, 0], [], []>} : vector<16x128xbf16>, vector<16x128xbf16>, vector<16x16xf32> -> vector<16x16xf32>
    %40 = arith.addf %39, %6 : vector<16x16xf32>
    %cst_21 = arith.constant dense<0xFF800000> : vector<16xf32>
    %41 = vector.multi_reduction <maximumf>, %40, %cst_21 [1] : vector<16x16xf32> to vector<16xf32>
    %42 = vector.shape_cast %41 : vector<16xf32> to vector<16x1xf32>
    %43 = vector.broadcast %42 : vector<16x1xf32> to vector<16x16xf32>
    %44 = arith.subf %40, %43 : vector<16x16xf32>
    %45 = math.exp %44 : vector<16x16xf32>
    %cst_22 = arith.constant dense<0.000000e+00> : vector<16xf32>
    %46 = vector.multi_reduction <add>, %45, %cst_22 [1] : vector<16x16xf32> to vector<16xf32>
    %47 = vector.shape_cast %46 : vector<16xf32> to vector<16x1xf32>
    %48 = tpu.reciprocal %47 {approx = true} : vector<16x1xf32> -> vector<16x1xf32>
    %49 = vector.broadcast %48 : vector<16x1xf32> to vector<16x16xf32>
    %50 = arith.mulf %45, %49 : vector<16x16xf32>
    %51 = arith.truncf %50 : vector<16x16xf32> to vector<16x16xbf16>
    %cst_23 = arith.constant dense<0.000000e+00> : vector<16x128xf32>
    %52 = tpu.matmul %51, %38, %cst_23 {dimension_numbers = #tpu.dot_dimension_numbers<[1], [0], [0], [1], [0, 0, 1, 1], [], []>} : vector<16x16xbf16>, vector<16x128xbf16>, vector<16x128xf32> -> vector<16x128xf32>
    %53 = arith.truncf %52 : vector<16x128xf32> to vector<16x128xbf16>
    %54 = tpu.concatenate %35, %53 in 1 : vector<16x128xbf16>, vector<16x128xbf16> -> vector<16x256xbf16>
    %c0_24 = arith.constant 0 : index
    %c0_25 = arith.constant 0 : index
    %55 = vector.load %arg8[%c0_24, %c0_25] : memref<256x256xbf16, #tpu.memory_space<vmem>>, vector<256x256xbf16>
    %cst_26 = arith.constant dense<0.000000e+00> : vector<16x256xf32>
    %56 = tpu.matmul %54, %55, %cst_26 {dimension_numbers = #tpu.dot_dimension_numbers<[1], [0], [0], [1], [0, 0, 1, 1], [], []>} : vector<16x256xbf16>, vector<256x256xbf16>, vector<16x256xf32> -> vector<16x256xf32>
    %c0_27 = arith.constant 0 : index
    %c0_28 = arith.constant 0 : index
    %57 = vector.load %arg9[%c0_27, %c0_28] : memref<1x256xf32, #tpu.memory_space<vmem>>, vector<1x256xf32>
    %58 = vector.broadcast %57 : vector<1x256xf32> to vector<16x256xf32>
    %59 = arith.addf %56, %58 : vector<16x256xf32>
    %cst_29 = arith.constant 5.000000e-01 : f32
    %60 = vector.broadcast %cst_29 : f32 to vector<16x1xf32>
    %61 = arith.cmpf ogt, %1, %60 : vector<16x1xf32>
    %cst_30 = arith.constant 0.000000e+00 : f32
    %62 = vector.shape_cast %61 : vector<16x1xi1> to vector<16x1xi1>
    %63 = vector.broadcast %62 : vector<16x1xi1> to vector<16x256xi1>
    %64 = vector.broadcast %cst_30 : f32 to vector<16x256xf32>
    %65 = arith.select %63, %64, %59 : vector<16x256xi1>, vector<16x256xf32>
    %66 = arith.truncf %65 : vector<16x256xf32> to vector<16x256xbf16>
    %c0_31 = arith.constant 0 : index
    %c0_32 = arith.constant 0 : index
    %67 = vector.load %arg10[%c0_31, %c0_32] : memref<256x32xbf16, #tpu.memory_space<vmem>>, vector<256x32xbf16>
    %cst_33 = arith.constant dense<0.000000e+00> : vector<16x32xf32>
    %68 = tpu.matmul %66, %67, %cst_33 {dimension_numbers = #tpu.dot_dimension_numbers<[1], [0], [0], [1], [0, 0, 1, 1], [], []>} : vector<16x256xbf16>, vector<256x32xbf16>, vector<16x32xf32> -> vector<16x32xf32>
    %c0_34 = arith.constant 0 : index
    %c0_35 = arith.constant 0 : index
    %69 = vector.load %arg11[%c0_34, %c0_35] : memref<1x32xf32, #tpu.memory_space<vmem>>, vector<1x32xf32>
    %70 = vector.broadcast %69 : vector<1x32xf32> to vector<16x32xf32>
    %71 = arith.addf %68, %70 : vector<16x32xf32>
    %cst_36 = arith.constant 0.000000e+00 : f32
    %72 = vector.broadcast %cst_36 : f32 to vector<16x32xf32>
    %73 = arith.maximumf %71, %72 : vector<16x32xf32>
    %c0_37 = arith.constant 0 : index
    %c0_38 = arith.constant 0 : index
    %74 = vector.load %arg12[%c0_37, %c0_38] : memref<1x32xf32, #tpu.memory_space<vmem>>, vector<1x32xf32>
    %75 = vector.broadcast %74 : vector<1x32xf32> to vector<16x32xf32>
    %76 = arith.mulf %73, %75 : vector<16x32xf32>
    %cst_39 = arith.constant dense<0.000000e+00> : vector<16xf32>
    %77 = vector.multi_reduction <add>, %76, %cst_39 [1] : vector<16x32xf32> to vector<16xf32>
    %78 = vector.shape_cast %77 : vector<16xf32> to vector<16x1xf32>
    %c0_40 = arith.constant 0 : index
    %c0_41 = arith.constant 0 : index
    %79 = memref.load %arg13[%c0_40, %c0_41] : memref<1x1xf32, #tpu.memory_space<smem>>
    %80 = vector.broadcast %79 : f32 to vector<16x1xf32>
    %81 = arith.addf %78, %80 : vector<16x1xf32>
    %82 = arith.negf %81 : vector<16x1xf32>
    %83 = math.exp %82 : vector<16x1xf32>
    %cst_42 = arith.constant 1.000000e+00 : f32
    %84 = vector.broadcast %cst_42 : f32 to vector<16x1xf32>
    %85 = arith.addf %84, %83 : vector<16x1xf32>
    %86 = arith.divf %84, %85 : vector<16x1xf32>
    %cst_43 = arith.constant 0.000000e+00 : f32
    %87 = vector.broadcast %cst_43 : f32 to vector<16x1xf32>
    %88 = arith.select %61, %87, %86 : vector<16x1xi1>, vector<16x1xf32>
    %c0_44 = arith.constant 0 : index
    %c0_45 = arith.constant 0 : index
    %89 = vector.load %arg14[%c0_44, %c0_45] : memref<16x1xf32, #tpu.memory_space<vmem>>, vector<16x1xf32>
    tpu.vector_store %arg14[%c0_44, %c0_45], %88 {strides = array<i32>} : memref<16x1xf32, #tpu.memory_space<vmem>>, vector<16x1xf32>,
    return
  }
  func.func @transform_0(%arg0: i32) -> (i32, i32) {
    %c0_i32 = arith.constant 0 : i32
    %c0_i32_0 = arith.constant 0 : i32
    return %arg0, %c0_i32 : i32, i32
  }
  func.func @transform_1(%arg0: i32) -> (i32, i32) {
    %c0_i32 = arith.constant 0 : i32
    %c0_i32_0 = arith.constant 0 : i32
    return %arg0, %c0_i32 : i32, i32
  }
  func.func @transform_2(%arg0: i32) -> (i32, i32, i32) {
    %c0_i32 = arith.constant 0 : i32
    %c0_i32_0 = arith.constant 0 : i32
    %c0_i32_1 = arith.constant 0 : i32
    return %arg0, %c0_i32, %c0_i32_0 : i32, i32, i32
  }
  func.func @transform_3(%arg0: i32) -> (i32, i32) {
    %c0_i32 = arith.constant 0 : i32
    %c0_i32_0 = arith.constant 0 : i32
    %c0_i32_1 = arith.constant 0 : i32
    return %c0_i32, %c0_i32_0 : i32, i32
  }
  func.func @transform_4(%arg0: i32) -> (i32, i32) {
    %c0_i32 = arith.constant 0 : i32
    %c0_i32_0 = arith.constant 0 : i32
    %c0_i32_1 = arith.constant 0 : i32
    return %c0_i32, %c0_i32_0 : i32, i32
  }
  func.func @transform_5(%arg0: i32) -> (i32, i32) {
    %c0_i32 = arith.constant 0 : i32
    %c0_i32_0 = arith.constant 0 : i32
    %c0_i32_1 = arith.constant 0 : i32
    return %c0_i32, %c0_i32_0 : i32, i32
  }
  func.func @transform_6(%arg0: i32) -> (i32, i32) {
    %c0_i32 = arith.constant 0 : i32
    %c0_i32_0 = arith.constant 0 : i32
    %c0_i32_1 = arith.constant 0 : i32
    return %c0_i32, %c0_i32_0 : i32, i32
  }
  func.func @transform_7(%arg0: i32) -> (i32, i32) {
    %c0_i32 = arith.constant 0 : i32
    %c0_i32_0 = arith.constant 0 : i32
    %c0_i32_1 = arith.constant 0 : i32
    return %c0_i32, %c0_i32_0 : i32, i32
  }
  func.func @transform_8(%arg0: i32) -> (i32, i32) {
    %c0_i32 = arith.constant 0 : i32
    %c0_i32_0 = arith.constant 0 : i32
    %c0_i32_1 = arith.constant 0 : i32
    return %c0_i32, %c0_i32_0 : i32, i32
  }
  func.func @transform_9(%arg0: i32) -> (i32, i32) {
    %c0_i32 = arith.constant 0 : i32
    %c0_i32_0 = arith.constant 0 : i32
    %c0_i32_1 = arith.constant 0 : i32
    return %c0_i32, %c0_i32_0 : i32, i32
  }
  func.func @transform_10(%arg0: i32) -> (i32, i32) {
    %c0_i32 = arith.constant 0 : i32
    %c0_i32_0 = arith.constant 0 : i32
    %c0_i32_1 = arith.constant 0 : i32
    return %c0_i32, %c0_i32_0 : i32, i32
  }
  func.func @transform_11(%arg0: i32) -> (i32, i32) {
    %c0_i32 = arith.constant 0 : i32
    %c0_i32_0 = arith.constant 0 : i32
    %c0_i32_1 = arith.constant 0 : i32
    return %c0_i32, %c0_i32_0 : i32, i32
  }
  func.func @transform_12(%arg0: i32) -> (i32, i32) {
    %c0_i32 = arith.constant 0 : i32
    %c0_i32_0 = arith.constant 0 : i32
    %c0_i32_1 = arith.constant 0 : i32
    return %c0_i32, %c0_i32_0 : i32, i32
  }
  func.func @transform_13(%arg0: i32) -> (i32, i32) {
    %c0_i32 = arith.constant 0 : i32
    %c0_i32_0 = arith.constant 0 : i32
    return %arg0, %c0_i32 : i32, i32
  }
}

</mosaic_0001>

<bundles_post_ra>
// kernel: tpu_custom_call.1
= control target key start
LH: loop header
LB: loop body
LE: loop exit
PB: predicated region body
PF: predicated region fallthrough
CT: control target
= control target key end

     0   :  { %s3037_s0 = inlined_call_operand.vmem [shape: bf16[32,16], index: 0, kind: input, shape index: {}]   ;;  %s3038_s1 = inlined_call_operand.vmem [shape: f32[32,1], index: 1, kind: input, shape index: {}]   ;;  %s3039_s2 = inlined_call_operand.vmem [shape: f32[2,1,16], index: 2, kind: input, shape index: {}]   ;;  %s3040_s3 = inlined_call_operand.vmem [shape: f32[16,16], index: 3, kind: input, shape index: {}]   ;;  %s3041_s4 = inlined_call_operand.vmem [shape: bf16[16,256], index: 4, kind: input, shape index: {}]   ;;  %s3042_s5 = inlined_call_operand.vmem [shape: f32[1,256], index: 5, kind: input, shape index: {}]   ;;  %s3043_s6 = inlined_call_operand.hbm [shape: bf16[256,768], index: 6, kind: input, shape index: {}]   ;;  %s3044_s7 = inlined_call_operand.hbm [shape: bf16[256,256], index: 7, kind: input, shape index: {}]   ;;  %s3045_s8 = inlined_call_operand.vmem [shape: f32[1,256], index: 8, kind: input, shape index: {}]   ;;  %s3046_s9 = inlined_call_operand.vmem [shape: bf16[256,32], index: 9, kind: input, shape index: {}]   ;;  %s3047_s10 = inlined_call_operand.vmem [shape: f32[1,32], index: 10, kind: input, shape index: {}]   ;;  %s3048_s11 = inlined_call_operand.vmem [shape: f32[1,32], index: 11, kind: input, shape index: {}]   ;;  %s3049_s12 = inlined_call_operand.<no memory space> [shape: f32[1,1], index: 12, kind: input, shape index: {}]   ;;  %s3050_s13 = inlined_call_operand.vmem [shape: f32[32,1], index: 13, kind: output, shape index: {}]  }
   0x1   :  { %18 = sst [smem:[#allocation2]] %s3049_s12 }
   0x2   :  { %19 = vsyncpa [#allocation4], 0 }
   0x3   :  { %20 = vsyncpa [#allocation6], 0  ;;  %s2783_s27 = smov 0  }
   0x4 LB: > { %s2701_s28 = smov [#allocation3]   ;;  %s2789_s30 = sadd.s32 4294967295, %s2699_s27   ;;  %s2699_s27 = sphi %s2783_s27, %s26_s27  }
   0x5   : > { %s366_s29 = sshll.u32 %s2701_s28, 4  ;;  %p2119_p0 = scmp.ge.s32.totalorder %s2699_s27, 1  ;;  %s367_s29 = int_to_ptr.vmem [resolvable:$true] %s366_s29 }
   0x6   : > { %p345_p1 = scmp.lt.s32.totalorder %s2699_s27, 3  ;;  %p3051_p3 = scmp.eq.s32.totalorder %s2789_s30, 0 }
   0x7   : > { %s2702_s14 = smov [#allocation5]   ;;  %s2629_s19 = scalar_lea.hbm %s3043_s6, 12288 }
   0x8   : > { %p2793_p2 = pnand %p2119_p0, %p345_p1  ;;  %s379_s15 = sshll.u32 %s2702_s14, 4  ;;  %s2806_s15 = int_to_ptr.vmem [resolvable:$true] %s379_s15 }
   0x9   : > { %p2630_p6 = scmp.ne.s32.totalorder %s3043_s6, %s2629_s19  ;;  %p2636_p10 = scmp.lt.u32.totalorder %s2629_s19, %s3043_s6 }
   0xa   : > { %s3053_s12 = scalar_select %p2793_p2, 1, 0 }
   0xb   : > { %p2363_p4 = pneg %p2793_p2 }
   0xd   : > { %p2802_p5 = pnand %p3051_p3, %p2363_p4 }
   0xf   : > { %p2631_p7 = pneg %p2802_p5 }
  0x11   : > { %p2632_p8 = pnand %p2631_p7, %p2630_p6 }
  0x13   : > { %p2633_p9 = pneg %p2632_p8 }
  0x15   : > { %p2638_p11 = pnand %p2636_p10, %p2633_p9 }
  0x17   : > { %2641 = shalt.err (!%p2638_p11)
}
  0x18   : > { %s2642_s24 = scalar_lea.vmem %s367_s29, 12288  ;;  %p2650_p1 = scmp.lt.s32.totalorder %s367_s29, %s367_s29 }
  0x19   : > { %p2643_p12 = scmp.ne.s32.totalorder %s367_s29, %s2642_s24  ;;  %p2651_p4 = scmp.lt.s32.totalorder %s2642_s24, %s2642_s24 }
  0x1b   : > { %p2645_p13 = pnand %p2643_p12, %p2631_p7  ;;  %p2652_p3 = por %p2651_p4, %p2650_p1 }
  0x1d   : > { %p2646_p0 = pneg %p2645_p13 }
  0x1f   : > { %p2653_p2 = pnand %p2652_p3, %p2646_p0 }
  0x21   : > { %2656 = shalt.err (!%p2653_p2)
}
  0x22   : > { %s2703_s25 = smov 384   ;;  %s2704_s26 = smov 24  }
  0x23   : > { %2366 = dma.hbm_to_vmem [thread:$0]  (!%p2802_p5), %s3043_s6, 12288, %s367_s29, [#allocation4], %s2703_s25, %s2703_s25, %s2704_s26  }
  0x24   : > { %s2657_s19 = scalar_lea.hbm %s3044_s7, 4096 }
  0x25   : > { %p2658_p6 = scmp.ne.s32.totalorder %s3044_s7, %s2657_s19  ;;  %p2664_p8 = scmp.lt.u32.totalorder %s2657_s19, %s3044_s7 }
  0x27   : > { %p2660_p2 = pnand %p2658_p6, %p2631_p7 }
  0x29   : > { %p2661_p3 = pneg %p2660_p2 }
  0x2b   : > { %p2666_p9 = pnand %p2664_p8, %p2661_p3 }
  0x2d   : > { %2669 = shalt.err (!%p2666_p9)
}
  0x2e   : > { %s2670_s29 = scalar_lea.vmem %s2806_s15, 4096  ;;  %p2678_p13 = scmp.lt.s32.totalorder %s2806_s15, %s2806_s15 }
  0x2f   : > { %p2671_p10 = scmp.ne.s32.totalorder %s2806_s15, %s2670_s29  ;;  %p2679_p0 = scmp.lt.s32.totalorder %s2670_s29, %s2670_s29 }
  0x31   : > { %p2673_p11 = pnand %p2671_p10, %p2631_p7  ;;  %p2680_p1 = por %p2679_p0, %p2678_p13 }
  0x33   : > { %p2674_p12 = pneg %p2673_p11 }
  0x35   : > { %p2681_p4 = pnand %p2680_p1, %p2674_p12 }
  0x37   : > { %2684 = shalt.err (!%p2681_p4)
}
  0x38   : > { %s2705_s24 = smov 128   ;;  %s2706_s25 = smov 8  }
  0x39   : > { %2369 = dma.hbm_to_vmem [thread:$0]  (!%p2802_p5), %s3044_s7, 4096, %s2806_s15, [#allocation6], %s2705_s24, %s2705_s24, %s2706_s25  }
  0x3a   : > { %p3055_p6 = scmp.ne.s32.totalorder %s3053_s12, 0 }
  0x3b   : > { %p3056_p7 = scmp.eq.s32.totalorder (!%p3055_p6), %s2789_s30, 0 }
  0x3c   : > { %434 = sbr.rel (%p3055_p6) target bundleno = 2431 (0x97f), region = 72 }
  0x43   : > { %2690 = dma.done.wait (%p3056_p7), [#allocation4], 12288   ;;  %p3057_p2 = pmov %p3056_p7 }
  0x45   : > { %2692 = vsyncadd (%p3057_p2), [#allocation4], 4294955008  ;;  %p3058_p3 = pmov %p3057_p2 }
  0x46   : > { %p3059_p8 = pmov %p3057_p2 }
  0x47   : > { %2694 = dma.done.wait (%p3058_p3), [#allocation6], 4096  }
  0x48   : > { %2696 = vsyncadd (%p3059_p8), [#allocation6], 4294963200  ;;  %s2126_s16 = sshll.u32 %s2789_s30, 1  ;;  %v2707_v0 = vmov 0   ;;  %v2393_v1 = vld [vmem:[%s3041_s4 + $0x4] ss:$8 sps:$4 sm:$0xff]  }
  0x49   : > { %592 = vmatprep.mubr.bf16.mxu0 %v2707_v0  ;;  %p491_p5 = scmp.lt.s32.totalorder %s2126_s16, 3  ;;  %2392 = vset.pattern.permute.xlu1 %v2707_v0  ;;  %v2395_v2 = vld [vmem:[%s3041_s4] ss:$8 sps:$4 sm:$0xff]   ;;  %vm556_vm0 = vcmask 130048   ;;  %v2397_v4 = vld [vmem:[#allocation3 + $0x4] ss:$24 sps:$4 sm:$0xff]  }
  0x4a   : > { %2391 = vset.pattern.permute.xlu0 %v2707_v0  ;;  %560 = vmatprep.subr.bf16.mxu0 %v2393_v1  ;;  %v2399_v5 = vld [vmem:[#allocation3] ss:$24 sps:$4 sm:$0xff]   ;;  %v2402_v7 = vld [vmem:[#allocation3 + $0xc] ss:$24 sps:$4 sm:$0xff]   ;;  %v2405_v9 = vld [vmem:[#allocation3 + $0x30] ss:$24 sps:$4 sm:$0xff]  }
  0x4b   : > { %s3061_s16 = smov (!%p491_p5, %s2126_s16), 3  ;;  %561 = vmatpush1.bf16.msra.mxu0 %v2395_v2  ;;  %v2400_v6 = vld [vmem:[#allocation3 + $0x8] ss:$24 sps:$4 sm:$0xff]   ;;  %1185 = vmatprep.subr.bf16.mxu1 %v2397_v4  ;;  %v2403_v8 = vld [vmem:[#allocation3 + $0x34] ss:$24 sps:$4 sm:$0xff]   ;;  %vm2709_vm1 = vmmov 0  }
  0x4c   : > { %s2127_s12 = sshll.u32 %s3061_s16, 2  ;;  %1186 = vmatpush1.bf16.msra.mxu1 %v2399_v5  ;;  %1228 = vmatprep.subr.bf16.mxu0 %v2402_v7  ;;  %v2408_v10 = vld [vmem:[#allocation3 + $0x3c] ss:$24 sps:$4 sm:$0xff]   ;;  %v2406_v11 = vld [vmem:[#allocation3 + $0x38] ss:$24 sps:$4 sm:$0xff]   ;;  %p502_p9 = scmp.lt.s32.totalorder %s2789_s30, 1 }
  0x4d   : > { %s494_s17 = scalar_lea.vmem %s3037_s0, %s2127_s12  ;;  %1187 = vmatprep.subr.bf16.mxu1 %v2403_v8  ;;  %v2409_v12 = vld [vmem:[#allocation3 + $0x64] ss:$24 sps:$4 sm:$0xff]   ;;  %v2411_v13 = vld [vmem:[#allocation3 + $0x60] ss:$24 sps:$4 sm:$0xff]   ;;  %v2415_v15 = vld [vmem:[#allocation3 + $0x94] ss:$24 sps:$4 sm:$0xff]  }
  0x4e   : > { %v2396_v3 = vld [vmem:[%s494_s17] sm:$0xff]   ;;  %v2420_v17 = vld [vmem:[#allocation3 + $0x9c] ss:$24 sps:$4 sm:$0xff]   ;;  %v2417_v18 = vld [vmem:[#allocation3 + $0x90] ss:$24 sps:$4 sm:$0xff]   ;;  %s3063_s30 = smov (!%p502_p9, %s2789_s30), 1 }
  0x4f   : > { %2136 = vmatmul.mubr.msk.bf16.vlgmr.msra.gmra.mrb[0].mxu0 %vm556_vm0, %v2396_v3  ;;  %v2414_v14 = vld [vmem:[#allocation3 + $0x6c] ss:$24 sps:$4 sm:$0xff]   ;;  %v2412_v16 = vld [vmem:[#allocation3 + $0x68] ss:$24 sps:$4 sm:$0xff]   ;;  %v2418_v20 = vld [vmem:[#allocation3 + $0x98] ss:$24 sps:$4 sm:$0xff]   ;;  %s504_s25 = scalar_lea.vmem %s3039_s2, %s3063_s30 }
  0x50   : > { %1229 = vmatpush1.bf16.msra.mxu0 %v2400_v6  ;;  %1188 = vmatpush1.bf16.msra.mxu1 %v2405_v9  ;;  %v2421_v19 = vld [vmem:[#allocation3 + $0xc4] ss:$24 sps:$4 sm:$0xff]   ;;  %v2423_v22 = vld [vmem:[#allocation3 + $0xc0] ss:$24 sps:$4 sm:$0xff]   ;;  %v2427_v23 = vld [vmem:[#allocation3 + $0xf4] ss:$24 sps:$4 sm:$0xff]   ;;  %v531_v6 = vlaneseq }
  0x51   : > { %1230 = vmatprep.subr.bf16.mxu0 %v2408_v10  ;;  %1189 = vmatprep.subr.bf16.mxu1 %v2409_v12  ;;  %v2426_v21 = vld [vmem:[#allocation3 + $0xcc] ss:$24 sps:$4 sm:$0xff]   ;;  %v2424_v24 = vld [vmem:[#allocation3 + $0xc8] ss:$24 sps:$4 sm:$0xff]   ;;  %v2432_v25 = vld [vmem:[#allocation3 + $0xfc] ss:$24 sps:$4 sm:$0xff]  }
  0x52   : > { %v2429_v26 = vld [vmem:[#allocation3 + $0xf0] ss:$24 sps:$4 sm:$0xff]   ;;  %v2433_v27 = vld [vmem:[#allocation3 + $0x124] ss:$24 sps:$4 sm:$0xff]   ;;  %v2435_v30 = vld [vmem:[#allocation3 + $0x120] ss:$24 sps:$4 sm:$0xff]  }
  0x53   : > { %v2430_v28 = vld [vmem:[#allocation3 + $0xf8] ss:$24 sps:$4 sm:$0xff]   ;;  %v2438_v29 = vld [vmem:[#allocation3 + $0x12c] ss:$24 sps:$4 sm:$0xff]   ;;  %v2436_v32 = vld [vmem:[#allocation3 + $0x128] ss:$24 sps:$4 sm:$0xff]  }
  0x54   : > { %1231 = vmatpush1.bf16.msra.mxu0 %v2406_v11  ;;  %1190 = vmatpush1.bf16.msra.mxu1 %v2411_v13  ;;  %v2439_v31 = vld [vmem:[#allocation3 + $0x154] ss:$24 sps:$4 sm:$0xff]   ;;  %v2441_v34 = vld [vmem:[#allocation3 + $0x150] ss:$24 sps:$4 sm:$0xff]   ;;  %v2445_v35 = vld [vmem:[#allocation3 + $0x184] ss:$24 sps:$4 sm:$0xff]  }
  0x55   : > { %1232 = vmatprep.subr.bf16.mxu0 %v2414_v14  ;;  %1191 = vmatprep.subr.bf16.mxu1 %v2415_v15  ;;  %v2444_v33 = vld [vmem:[#allocation3 + $0x15c] ss:$24 sps:$4 sm:$0xff]   ;;  %v2442_v36 = vld [vmem:[#allocation3 + $0x158] ss:$24 sps:$4 sm:$0xff]   ;;  %v2450_v37 = vld [vmem:[#allocation3 + $0x18c] ss:$24 sps:$4 sm:$0xff]  }
  0x56   : > { %v2447_v38 = vld [vmem:[#allocation3 + $0x180] ss:$24 sps:$4 sm:$0xff]   ;;  %v2451_v39 = vld [vmem:[#allocation3 + $0x1b4] ss:$24 sps:$4 sm:$0xff]   ;;  %v2453_v42 = vld [vmem:[#allocation3 + $0x1b0] ss:$24 sps:$4 sm:$0xff]  }
  0x57   : > { %v2448_v40 = vld [vmem:[#allocation3 + $0x188] ss:$24 sps:$4 sm:$0xff]   ;;  %v2456_v41 = vld [vmem:[#allocation3 + $0x1bc] ss:$24 sps:$4 sm:$0xff]   ;;  %v2454_v43 = vld [vmem:[#allocation3 + $0x1b8] ss:$24 sps:$4 sm:$0xff]  }
  0x58   : > { %1233 = vmatpush1.bf16.msra.mxu0 %v2412_v16  ;;  %1192 = vmatpush1.bf16.msra.mxu1 %v2417_v18  ;;  %v2457_v44 = vld [vmem:[#allocation3 + $0x1e4] ss:$24 sps:$4 sm:$0xff]   ;;  %v2459_v46 = vld [vmem:[#allocation3 + $0x1e0] ss:$24 sps:$4 sm:$0xff]   ;;  %v2463_v47 = vld [vmem:[#allocation3 + $0x214] ss:$24 sps:$4 sm:$0xff]  }
  0x59   : > { %1234 = vmatprep.subr.bf16.mxu0 %v2420_v17  ;;  %1193 = vmatprep.subr.bf16.mxu1 %v2421_v19  ;;  %v2462_v45 = vld [vmem:[#allocation3 + $0x1ec] ss:$24 sps:$4 sm:$0xff]   ;;  %v2460_v48 = vld [vmem:[#allocation3 + $0x1e8] ss:$24 sps:$4 sm:$0xff]   ;;  %v2468_v49 = vld [vmem:[#allocation3 + $0x21c] ss:$24 sps:$4 sm:$0xff]  }
  0x5a   : > { %v2465_v50 = vld [vmem:[#allocation3 + $0x210] ss:$24 sps:$4 sm:$0xff]   ;;  %v2469_v51 = vld [vmem:[#allocation3 + $0x244] ss:$24 sps:$4 sm:$0xff]   ;;  %v2471_v54 = vld [vmem:[#allocation3 + $0x240] ss:$24 sps:$4 sm:$0xff]  }
  0x5b   : > { %v2466_v52 = vld [vmem:[#allocation3 + $0x218] ss:$24 sps:$4 sm:$0xff]   ;;  %v2474_v53 = vld [vmem:[#allocation3 + $0x24c] ss:$24 sps:$4 sm:$0xff]   ;;  %v2472_v56 = vld [vmem:[#allocation3 + $0x248] ss:$24 sps:$4 sm:$0xff]  }
  0x5c   : > { %1235 = vmatpush1.bf16.msra.mxu0 %v2418_v20  ;;  %1194 = vmatpush1.bf16.msra.mxu1 %v2423_v22  ;;  %v2475_v55 = vld [vmem:[#allocation3 + $0x274] ss:$24 sps:$4 sm:$0xff]   ;;  %v2477_v58 = vld [vmem:[#allocation3 + $0x270] ss:$24 sps:$4 sm:$0xff]   ;;  %v2481_v60 = vld [vmem:[#allocation3 + $0x2a4] ss:$24 sps:$4 sm:$0xff]  }
  0x5d   : > { %1236 = vmatprep.subr.bf16.mxu0 %v2426_v21  ;;  %1195 = vmatprep.subr.bf16.mxu1 %v2427_v23  ;;  %v2480_v57 = vld [vmem:[#allocation3 + $0x27c] ss:$24 sps:$4 sm:$0xff]   ;;  %v2478_v59 = vld [vmem:[#allocation3 + $0x278] ss:$24 sps:$4 sm:$0xff]   ;;  %v2486_v62 = vld [vmem:[#allocation3 + $0x2ac] ss:$24 sps:$4 sm:$0xff]  }
  0x5e   : > { %v2483_v61 = vld [vmem:[#allocation3 + $0x2a0] ss:$24 sps:$4 sm:$0xff]   ;;  %v2487_v1 = vld [vmem:[#allocation3 + $0x2d4] ss:$24 sps:$4 sm:$0xff]   ;;  %v2489_v2 = vld [vmem:[#allocation3 + $0x2d0] ss:$24 sps:$4 sm:$0xff]  }
  0x5f   : > { %v2484_v63 = vld [vmem:[#allocation3 + $0x2a8] ss:$24 sps:$4 sm:$0xff]   ;;  %v2492_v3 = vld [vmem:[#allocation3 + $0x2dc] ss:$24 sps:$4 sm:$0xff]   ;;  %v2490_v4 = vld [vmem:[#allocation3 + $0x2d8] ss:$24 sps:$4 sm:$0xff]  }
  0x60   : > { %1237 = vmatpush1.bf16.msra.mxu0 %v2424_v24  ;;  %1196 = vmatpush1.bf16.msra.mxu1 %v2429_v26  ;;  %v2495_v5 = vld [vmem:[#allocation3 + $0x14] ss:$24 sps:$4 sm:$0xff]   ;;  %v2882_v7 = vshrl.u32 %v531_v6, 7  ;;  %v529_v9 = vld [vmem:[%s3042_s5] sm:$0x3]  ;;  %s2129_s30 = sshll.u32 %s3061_s16, 3 }
  0x61   : > { %1238 = vmatprep.subr.bf16.mxu0 %v2432_v25  ;;  %1197 = vmatprep.subr.bf16.mxu1 %v2433_v27  ;;  %v2493_v27 = vld [vmem:[#allocation3 + $0x10] ss:$24 sps:$4 sm:$0xff]   ;;  %s500_s29 = scalar_lea.vmem %s3038_s1, %s2129_s30  ;;  %vm1990_vm7 = vcmask 261120   ;;  %s1997_s26 = sld [smem:[#allocation2]]  ;;  %vm2015_vm8 = vcmask 7168  }
  0x62   : > { %v533_v8 = vsub.s32 0, %v2882_v7  ;;  %v537_v10 = vsub.s32 1, %v2882_v7  ;;  %v2267_v7 = vld [vmem:[%s3047_s10] ss:$0 sm:$0xff]  ;;  %s509_s15 = scalar_lea.vmem %s3050_s13, %s2129_s30 }
  0x64   : > { %1239 = vmatpush1.bf16.msra.mxu0 %v2430_v28  ;;  %1198 = vmatpush1.bf16.msra.mxu1 %v2435_v30  ;;  %v534_v11 = vrot.slane %v529_v9, %v533_v8  ;;  %v538_v12 = vrot.slane %v529_v9, %v537_v10  ;;  %v2498_v28 = vld [vmem:[#allocation3 + $0x44] ss:$24 sps:$4 sm:$0xff]   ;;  %v2501_v30 = vld [vmem:[#allocation3 + $0x74] ss:$24 sps:$4 sm:$0xff]  }
  0x65   : > { %1240 = vmatprep.subr.bf16.mxu0 %v2438_v29  ;;  %1199 = vmatprep.subr.bf16.mxu1 %v2439_v31  ;;  %v2496_v29 = vld [vmem:[#allocation3 + $0x40] ss:$24 sps:$4 sm:$0xff]   ;;  %v2499_v31 = vld [vmem:[#allocation3 + $0x70] ss:$24 sps:$4 sm:$0xff]  }
  0x68   : > { %1241 = vmatpush1.bf16.msra.mxu0 %v2436_v32  ;;  %1200 = vmatpush1.bf16.msra.mxu1 %v2441_v34  ;;  %v2504_v32 = vld [vmem:[#allocation3 + $0xa4] ss:$24 sps:$4 sm:$0xff]   ;;  %v2507_v34 = vld [vmem:[#allocation3 + $0xd4] ss:$24 sps:$4 sm:$0xff]  }
  0x69   : > { %1242 = vmatprep.subr.bf16.mxu0 %v2444_v33  ;;  %1201 = vmatprep.subr.bf16.mxu1 %v2445_v35  ;;  %v2502_v33 = vld [vmem:[#allocation3 + $0xa0] ss:$24 sps:$4 sm:$0xff]   ;;  %v2505_v35 = vld [vmem:[#allocation3 + $0xd0] ss:$24 sps:$4 sm:$0xff]  }
  0x6c   : > { %1243 = vmatpush1.bf16.msra.mxu0 %v2442_v36  ;;  %1202 = vmatpush1.bf16.msra.mxu1 %v2447_v38  ;;  %v2510_v36 = vld [vmem:[#allocation3 + $0x104] ss:$24 sps:$4 sm:$0xff]   ;;  %v2513_v38 = vld [vmem:[#allocation3 + $0x134] ss:$24 sps:$4 sm:$0xff]  }
  0x6d   : > { %1244 = vmatprep.subr.bf16.mxu0 %v2450_v37  ;;  %1203 = vmatprep.subr.bf16.mxu1 %v2451_v39  ;;  %v2508_v37 = vld [vmem:[#allocation3 + $0x100] ss:$24 sps:$4 sm:$0xff]   ;;  %v2511_v39 = vld [vmem:[#allocation3 + $0x130] ss:$24 sps:$4 sm:$0xff]  }
  0x70   : > { %1245 = vmatpush1.bf16.msra.mxu0 %v2448_v40  ;;  %1204 = vmatpush1.bf16.msra.mxu1 %v2453_v42  ;;  %v2516_v40 = vld [vmem:[#allocation3 + $0x164] ss:$24 sps:$4 sm:$0xff]   ;;  %v2519_v42 = vld [vmem:[#allocation3 + $0x194] ss:$24 sps:$4 sm:$0xff]  }
  0x71   : > { %1246 = vmatprep.subr.bf16.mxu0 %v2456_v41  ;;  %1205 = vmatprep.subr.bf16.mxu1 %v2457_v44  ;;  %v2514_v41 = vld [vmem:[#allocation3 + $0x160] ss:$24 sps:$4 sm:$0xff]   ;;  %v2522_v44 = vld [vmem:[#allocation3 + $0x1c4] ss:$24 sps:$4 sm:$0xff]  }
  0x74   : > { %1247 = vmatpush1.bf16.msra.mxu0 %v2454_v43  ;;  %1206 = vmatpush1.bf16.msra.mxu1 %v2459_v46  ;;  %v2517_v43 = vld [vmem:[#allocation3 + $0x190] ss:$24 sps:$4 sm:$0xff]   ;;  %v2525_v46 = vld [vmem:[#allocation3 + $0x1f4] ss:$24 sps:$4 sm:$0xff]  }
  0x75   : > { %1248 = vmatprep.subr.bf16.mxu0 %v2462_v45  ;;  %1207 = vmatprep.subr.bf16.mxu1 %v2463_v47  ;;  %v2520_v45 = vld [vmem:[#allocation3 + $0x1c0] ss:$24 sps:$4 sm:$0xff]   ;;  %v2523_v47 = vld [vmem:[#allocation3 + $0x1f0] ss:$24 sps:$4 sm:$0xff]  }
  0x78   : > { %1249 = vmatpush1.bf16.msra.mxu0 %v2460_v48  ;;  %1208 = vmatpush1.bf16.msra.mxu1 %v2465_v50  ;;  %v2528_v48 = vld [vmem:[#allocation3 + $0x224] ss:$24 sps:$4 sm:$0xff]   ;;  %v2531_v50 = vld [vmem:[#allocation3 + $0x254] ss:$24 sps:$4 sm:$0xff]  }
  0x79   : > { %1250 = vmatprep.subr.bf16.mxu0 %v2468_v49  ;;  %1209 = vmatprep.subr.bf16.mxu1 %v2469_v51  ;;  %v2526_v49 = vld [vmem:[#allocation3 + $0x220] ss:$24 sps:$4 sm:$0xff]   ;;  %v2529_v51 = vld [vmem:[#allocation3 + $0x250] ss:$24 sps:$4 sm:$0xff]  }
  0x7c   : > { %1251 = vmatpush1.bf16.msra.mxu0 %v2466_v52  ;;  %1210 = vmatpush1.bf16.msra.mxu1 %v2471_v54  ;;  %v2534_v52 = vld [vmem:[#allocation3 + $0x284] ss:$24 sps:$4 sm:$0xff]   ;;  %v2537_v54 = vld [vmem:[#allocation3 + $0x2b4] ss:$24 sps:$4 sm:$0xff]  }
  0x7d   : > { %1252 = vmatprep.subr.bf16.mxu0 %v2474_v53  ;;  %1211 = vmatprep.subr.bf16.mxu1 %v2475_v55  ;;  %v2532_v53 = vld [vmem:[#allocation3 + $0x280] ss:$24 sps:$4 sm:$0xff]   ;;  %v2535_v55 = vld [vmem:[#allocation3 + $0x2b0] ss:$24 sps:$4 sm:$0xff]  }
  0x80   : > { %1253 = vmatpush1.bf16.msra.mxu0 %v2472_v56  ;;  %1212 = vmatpush1.bf16.msra.mxu1 %v2477_v58  ;;  %v2540_v56 = vld [vmem:[#allocation3 + $0x2e4] ss:$24 sps:$4 sm:$0xff]   ;;  %v2708_v58 = vmov 0.0  }
  0x81   : > { %1254 = vmatprep.subr.bf16.mxu0 %v2480_v57  ;;  %1213 = vmatprep.subr.bf16.mxu1 %v2481_v60  ;;  %v2538_v57 = vld [vmem:[#allocation3 + $0x2e0] ss:$24 sps:$4 sm:$0xff]  }
  0x84   : > { %1255 = vmatpush1.bf16.msra.mxu0 %v2478_v59  ;;  %1214 = vmatpush1.bf16.msra.mxu1 %v2483_v61 }
  0x85   : > { %1256 = vmatprep.subr.bf16.mxu0 %v2486_v62  ;;  %1215 = vmatprep.subr.bf16.mxu1 %v2487_v1 }
  0x88   : > { %1257 = vmatpush1.bf16.msra.mxu0 %v2484_v63  ;;  %1216 = vmatpush1.bf16.msra.mxu1 %v2489_v2 }
  0x89   : > { %1258 = vmatprep.subr.bf16.mxu0 %v2492_v3  ;;  %1271 = vmatprep.subr.bf16.mxu1 %v2495_v5 }
  0x8c   : > { %1259 = vmatpush1.bf16.msra.mxu0 %v2490_v4 }
  0x8d   : > { %2331 = vmatprep.subr.bf16.mxu0 %v2708_v58 }
 0x122   : > { %v594_v13 = vpop.f32.mrb[0].mxu0 }
 0x123   : > { %v595_v14 = vadd.f32 %v594_v13, %v534_v11  ;;  %v596_v15 = vpop.f32.mrb[1].mxu0 }
 0x124   : > { %v597_v16 = vadd.f32 %v596_v15, %v538_v12  ;;  %v598_v17 = vpop.f32.mrb[2].mxu0 }
 0x125   : > { %v599_v18 = vadd.f32 %v598_v17, %v534_v11  ;;  %v600_v19 = vpop.f32.mrb[3].mxu0  ;;  %v603_v21 = vmax.f32 %v595_v14, 0.0  ;;  %v516_v17 = vld [vmem:[%s3040_s3] sm:$0xff] }
 0x126   : > { %v601_v20 = vadd.f32 %v600_v19, %v538_v12  ;;  %v604_v23 = vmax.f32 %v597_v16, 0.0  ;;  %v517_v19 = vld [vmem:[%s3040_s3 + $0x8] sm:$0xff] }
 0x127   : > { %v605_v22 = vmax.f32 %v599_v18, 0.0  ;;  %v2132_v18 = vld [vmem:[%s504_s25] ss:$0 sm:$0xff] }
 0x128   : > { %v606_v24 = vmax.f32 %v601_v20, 0.0  ;;  %v525_v20 = vadd.f32 %v2132_v18, %v516_v17  ;;  %v2541_v17 = vld [vmem:[#allocation5] ss:$8 sps:$4 sm:$0xff]  }
 0x129   : > { %v2893_v25 = vpack.c.bf16 %v605_v22, %v603_v21  ;;  %v526_v21 = vadd.f32 %v2132_v18, %v517_v19  ;;  %v2546_v19 = vld [vmem:[#allocation5 + $0x14] ss:$8 sps:$4 sm:$0xff]  }
 0x12a   : > { %v608_v26 = vpack.c.bf16 %v606_v24, %v604_v23 }
 0x12c   : > { %1217 = vmatprep.mubr.bf16.mxu1 %v608_v26  ;;  %1260 = vmatprep.mubr.bf16.mxu0 %v608_v26 }
 0x12d   : > { %1218 = vmatmul.mubr.bf16.vlgmr.msra.gmra.mrb[0].mxu1 %v2893_v25  ;;  %1261 = vmatmul.mubr.bf16.vlgmr.msra.gmra.mrb[4].mxu0 %v2893_v25 }
 0x12e   : > { %1272 = vmatpush1.bf16.msra.mxu1 %v2493_v27  ;;  %1303 = vmatprep.mubr.bf16.mxu1 %v608_v26 }
 0x12f   : > { %1273 = vmatprep.subr.bf16.mxu1 %v2498_v28  ;;  %2333 = vmatprep.mubr.msk.bf16.mxu0 %vm2709_vm1, %v2708_v58 }
 0x132   : > { %1274 = vmatpush1.bf16.msra.mxu1 %v2496_v29 }
 0x133   : > { %1275 = vmatprep.subr.bf16.mxu1 %v2501_v30 }
 0x136   : > { %1276 = vmatpush1.bf16.msra.mxu1 %v2499_v31 }
 0x137   : > { %1277 = vmatprep.subr.bf16.mxu1 %v2504_v32 }
 0x13a   : > { %1278 = vmatpush1.bf16.msra.mxu1 %v2502_v33 }
 0x13b   : > { %1279 = vmatprep.subr.bf16.mxu1 %v2507_v34 }
 0x13e   : > { %1280 = vmatpush1.bf16.msra.mxu1 %v2505_v35 }
 0x13f   : > { %1281 = vmatprep.subr.bf16.mxu1 %v2510_v36 }
 0x142   : > { %1282 = vmatpush1.bf16.msra.mxu1 %v2508_v37 }
 0x143   : > { %1283 = vmatprep.subr.bf16.mxu1 %v2513_v38 }
 0x146   : > { %1284 = vmatpush1.bf16.msra.mxu1 %v2511_v39 }
 0x147   : > { %1285 = vmatprep.subr.bf16.mxu1 %v2516_v40 }
 0x14a   : > { %1286 = vmatpush1.bf16.msra.mxu1 %v2514_v41 }
 0x14b   : > { %1287 = vmatprep.subr.bf16.mxu1 %v2519_v42 }
 0x14e   : > { %1288 = vmatpush1.bf16.msra.mxu1 %v2517_v43 }
 0x14f   : > { %1289 = vmatprep.subr.bf16.mxu1 %v2522_v44 }
 0x152   : > { %1290 = vmatpush1.bf16.msra.mxu1 %v2520_v45 }
 0x153   : > { %1291 = vmatprep.subr.bf16.mxu1 %v2525_v46 }
 0x156   : > { %1292 = vmatpush1.bf16.msra.mxu1 %v2523_v47 }
 0x157   : > { %1293 = vmatprep.subr.bf16.mxu1 %v2528_v48 }
 0x15a   : > { %1294 = vmatpush1.bf16.msra.mxu1 %v2526_v49 }
 0x15b   : > { %1295 = vmatprep.subr.bf16.mxu1 %v2531_v50 }
 0x15e   : > { %1296 = vmatpush1.bf16.msra.mxu1 %v2529_v51 }
 0x15f   : > { %1297 = vmatprep.subr.bf16.mxu1 %v2534_v52 }
 0x162   : > { %1298 = vmatpush1.bf16.msra.mxu1 %v2532_v53 }
 0x163   : > { %1299 = vmatprep.subr.bf16.mxu1 %v2537_v54 }
 0x166   : > { %1300 = vmatpush1.bf16.msra.mxu1 %v2535_v55 }
 0x167   : > { %1301 = vmatprep.subr.bf16.mxu1 %v2540_v56 }
 0x16a   : > { %1302 = vmatpush1.bf16.msra.mxu1 %v2538_v57 }
 0x16d   : > { %1304 = vmatmul.mubr.bf16.vlgmr.msra.gmra.mrb[4].mxu1 %v2893_v25 }
 0x200   : > { %v1219_v59 = vpop.f32.mrb[0].mxu1  ;;  %v1262_v60 = vpop.f32.mrb[4].mxu0 }
 0x201   : > { %v2901_v61 = vpop.f32.mrb[1].mxu1  ;;  %v2903_v62 = vpop.f32.mrb[5].mxu0 }
 0x202   : > { %v1223_v63 = vpop.f32.mrb[2].mxu1  ;;  %v1266_v1 = vpop.f32.mrb[6].mxu0 }
 0x203   : > { %v1314_v2 = vpack.c.bf16 %v1223_v63, %v1219_v59  ;;  %v1316_v3 = vpack.c.bf16 %v1266_v1, %v1262_v60  ;;  %v1225_v4 = vpop.f32.mrb[3].mxu1  ;;  %v1268_v5 = vpop.f32.mrb[7].mxu0 }
 0x204   : > { %v1315_v6 = vpack.c.bf16 %v1225_v4, %v2901_v61  ;;  %v1317_v9 = vpack.c.bf16 %v1268_v5, %v2903_v62 }
 0x205   : > { %2332 = vmatpush3.bf16.xpose.msra.mxu0 %v1316_v3 }
 0x206   : > { %2337 = vmatprep.subr.bf16.mxu0 %v2708_v58 }
 0x20c   : > { %2334 = vmatmul.mubr.bf16.vlgmr.msra.gmra.mrb[8].mxu0 %v1314_v2 }
 0x20d   : > { %2339 = vmatprep.mubr.msk.bf16.mxu0 %vm2709_vm1, %v2708_v58 }
 0x240   : > { %v1305_v11 = vpop.f32.mrb[4].mxu1 }
 0x241   : > { %v1307_v12 = vpop.f32.mrb[5].mxu1 }
 0x242   : > { %v1309_v13 = vpop.f32.mrb[6].mxu1 }
 0x243   : > { %v1318_v14 = vpack.c.bf16 %v1309_v13, %v1305_v11  ;;  %v1311_v15 = vpop.f32.mrb[7].mxu1 }
 0x244   : > { %v1319_v16 = vpack.c.bf16 %v1311_v15, %v1307_v12 }
 0x245   : > { %2338 = vmatpush3.bf16.msra.mxu0 %v1318_v14 }
 0x246   : > { %2343 = vmatprep.subr.bf16.mxu0 %v2708_v58 }
 0x2df   : > { %v1354_v22 = vpop.f32.mrb[8].mxu0 }
 0x2e0   : > { %v1355_v23 = vadd.f32 %v1354_v22, %v525_v20  ;;  %v2335_v24 = vpop.f32.mrb[9].mxu0  ;;  %v2547_v22 = vld [vmem:[#allocation5 + $0x20] ss:$8 sps:$4 sm:$0xff]  }
 0x2e1   : > { %v1357_v25 = vpop.f32.mrb[10].mxu0  ;;  %v2550_v24 = vld [vmem:[#allocation5 + $0x30] ss:$8 sps:$4 sm:$0xff]  }
 0x2e2   : > { %v1358_v26 = vadd.f32 %v1357_v25, %v526_v21  ;;  %v2336_v27 = vpop.f32.mrb[11].mxu0  ;;  %v1361_v28 = vsel %vm556_vm0, %v1355_v23, -inf  ;;  %v2555_v25 = vld [vmem:[#allocation5 + $0x44] ss:$8 sps:$4 sm:$0xff]  }
 0x2e3   : > { %1362 = vmax.xlane.f32.xlu0 %v1361_v28  ;;  %v2558_v27 = vld [vmem:[#allocation5 + $0x54] ss:$8 sps:$4 sm:$0xff]   ;;  %v2556_v28 = vld [vmem:[#allocation5 + $0x50] ss:$8 sps:$4 sm:$0xff]  }
 0x2e4   : > { %v1364_v29 = vsel %vm556_vm0, %v1358_v26, -inf }
 0x2e7   : > { %1365 = vmax.xlane.f32.xlu0 %v1364_v29  ;;  %v2561_v29 = vld [vmem:[#allocation5 + $0x64] ss:$8 sps:$4 sm:$0xff]  }
 0x370   : > { %v1363_v30 = vpop.xlane.xlu0 %1362 }
 0x371   : > { %v1367_v31 = vsub.f32 %v1355_v23, %v1363_v30  ;;  %v2552_v23 = vld [vmem:[#allocation5 + $0x34] ss:$8 sps:$4 sm:$0xff]   ;;  %v2559_v30 = vld [vmem:[#allocation5 + $0x60] ss:$8 sps:$4 sm:$0xff]  }
 0x373   : > { %v1369_v32 = vmul.f32 1.442695, %v1367_v31  ;;  %v2564_v31 = vld [vmem:[#allocation5 + $0x74] ss:$8 sps:$4 sm:$0xff]  }
 0x374   : > { %v1366_v33 = vpop.xlane.xlu0 %1365 }
 0x375   : > { %2605 = vpow2.f32 %v1369_v32  ;;  %v1368_v34 = vsub.f32 %v1358_v26, %v1366_v33  ;;  %v2553_v26 = vld [vmem:[#allocation5 + $0x40] ss:$8 sps:$4 sm:$0xff]   ;;  %v2562_v32 = vld [vmem:[#allocation5 + $0x70] ss:$8 sps:$4 sm:$0xff]   ;;  %v2567_v33 = vld [vmem:[#allocation5 + $0x84] ss:$8 sps:$4 sm:$0xff]  }
 0x377   : > { %v1371_v35 = vmul.f32 1.442695, %v1368_v34  ;;  %v2565_v34 = vld [vmem:[#allocation5 + $0x80] ss:$8 sps:$4 sm:$0xff]  }
 0x379   : > { %2607 = vpow2.f32 %v1371_v35  ;;  %v2570_v35 = vld [vmem:[#allocation5 + $0x94] ss:$8 sps:$4 sm:$0xff]  }
 0x37f   : > { %v2606_v36 = vpop.eup %2605 }
 0x380   : > { %v1373_v37 = vsel %vm556_vm0, %v2606_v36, 0.0 }
 0x381   : > { %1374 = vadd.xlane.f32.xlu1 %v1373_v37  ;;  %v2573_v37 = vld [vmem:[#allocation5 + $0xa4] ss:$8 sps:$4 sm:$0xff]  }
 0x383   : > { %v2608_v38 = vpop.eup %2607 }
 0x384   : > { %v1376_v39 = vsel %vm556_vm0, %v2608_v38, 0.0 }
 0x385   : > { %1377 = vadd.xlane.f32.xlu1 %v1376_v39  ;;  %v2576_v39 = vld [vmem:[#allocation5 + $0xb4] ss:$8 sps:$4 sm:$0xff]  }
 0x40e   : > { %v1375_v40 = vpop.xlane.xlu1 %1374 }
 0x40f   : > { %2609 = vrcp.f32 %v1375_v40  ;;  %v2574_v40 = vld [vmem:[#allocation5 + $0xb0] ss:$8 sps:$4 sm:$0xff]  }
 0x412   : > { %v1378_v41 = vpop.xlane.xlu1 %1377 }
 0x413   : > { %2611 = vrcp.f32 %v1378_v41  ;;  %v2579_v41 = vld [vmem:[#allocation5 + $0xc4] ss:$8 sps:$4 sm:$0xff]  }
 0x419   : > { %v2610_v42 = vpop.eup %2609 }
 0x41a   : > { %v1381_v44 = vmul.f32 %v2610_v42, %v2606_v36  ;;  %v2568_v36 = vld [vmem:[#allocation5 + $0x90] ss:$8 sps:$4 sm:$0xff]   ;;  %v2577_v42 = vld [vmem:[#allocation5 + $0xc0] ss:$8 sps:$4 sm:$0xff]  }
 0x41d   : > { %v2612_v43 = vpop.eup %2611 }
 0x41e   : > { %v1382_v45 = vmul.f32 %v2612_v43, %v2608_v38  ;;  %v2571_v38 = vld [vmem:[#allocation5 + $0xa0] ss:$8 sps:$4 sm:$0xff]   ;;  %v2582_v43 = vld [vmem:[#allocation5 + $0xd4] ss:$8 sps:$4 sm:$0xff]  }
 0x420   : > { %v1383_v46 = vpack.c.bf16 %v1382_v45, %v1381_v44  ;;  %v2580_v44 = vld [vmem:[#allocation5 + $0xd0] ss:$8 sps:$4 sm:$0xff]   ;;  %v2585_v45 = vld [vmem:[#allocation5 + $0xe4] ss:$8 sps:$4 sm:$0xff]  }
 0x422   : > { %2340 = vmatmul.mubr.msk.bf16.vlgmr.msra.gmra.mrb[12].mxu0 %vm556_vm0, %v1383_v46  ;;  %v2583_v46 = vld [vmem:[#allocation5 + $0xe0] ss:$8 sps:$4 sm:$0xff]  }
 0x423   : > { %2344 = vmatpush3.bf16.xpose.msra.mxu0 %v1317_v9  ;;  %2345 = vmatprep.mubr.msk.bf16.mxu0 %vm2709_vm1, %v2708_v58  ;;  %v2543_v9 = vld [vmem:[#allocation5 + $0x4] ss:$8 sps:$4 sm:$0xff]  }
 0x424   : > { %2349 = vmatprep.subr.bf16.mxu0 %v2708_v58 }
 0x42a   : > { %2346 = vmatmul.mubr.bf16.vlgmr.msra.gmra.mrb[16].mxu0 %v1315_v6 }
 0x42b   : > { %2350 = vmatpush3.bf16.msra.mxu0 %v1319_v16  ;;  %2351 = vmatprep.mubr.msk.bf16.mxu0 %vm2709_vm1, %v2708_v58 }
 0x42c   : > { %1742 = vmatprep.subr.bf16.mxu0 %v2543_v9 }
 0x4f5   : > { %v2932_v47 = vpop.f32.mrb[12].mxu0 }
 0x4f6   : > { %v2341_v48 = vpop.f32.mrb[13].mxu0 }
 0x4f7   : > { %v2934_v49 = vpop.f32.mrb[14].mxu0  ;;  %v2588_v48 = vld [vmem:[#allocation5 + $0xf4] ss:$8 sps:$4 sm:$0xff]  }
 0x4f8   : > { %v1428_v50 = vpack.c.bf16 %v2934_v49, %v2932_v47  ;;  %v2342_v51 = vpop.f32.mrb[15].mxu0  ;;  %v1570_v47 = vld [vmem:[%s3045_s8] sm:$0x3] }
 0x4f9   : > { %v2586_v51 = vld [vmem:[#allocation5 + $0xf0] ss:$8 sps:$4 sm:$0xff]   ;;  %v1575_v49 = vrot.slane %v1570_v47, %v533_v8 }
 0x4fd   : > { %v1463_v52 = vpop.f32.mrb[16].mxu0 }
 0x4fe   : > { %v1464_v53 = vadd.f32 %v1463_v52, %v525_v20  ;;  %v2347_v54 = vpop.f32.mrb[17].mxu0  ;;  %v2544_v20 = vld [vmem:[#allocation5 + $0x10] ss:$8 sps:$4 sm:$0xff]   ;;  %v2589_v52 = vld [vmem:[%s3046_s9 + $0x40] sm:$0xff]  }
 0x4ff   : > { %v1466_v55 = vpop.f32.mrb[18].mxu0  ;;  %v2591_v54 = vld [vmem:[%s3046_s9 + $0x48] sm:$0xff]   ;;  %2309 = vmatprep.subr.bf16.mxu1 %v2589_v52 }
 0x500   : > { %v1467_v56 = vadd.f32 %v1466_v55, %v526_v21  ;;  %v2348_v57 = vpop.f32.mrb[19].mxu0  ;;  %v1470_v59 = vsel %vm556_vm0, %v1464_v53, -inf  ;;  %v2549_v21 = vld [vmem:[#allocation5 + $0x24] ss:$8 sps:$4 sm:$0xff]  }
 0x501   : > { %1471 = vmax.xlane.f32.xlu0 %v1470_v59  ;;  %v2958_v55 = vld [vmem:[%s500_s29] sm:$0xff]  ;;  %v2592_v57 = vld [vmem:[%s3046_s9 + $0x8] sm:$0xff]  }
 0x502   : > { %v1473_v58 = vsel %vm556_vm0, %v1467_v56, -inf  ;;  %vm1785_vm2 = vcmp.gt.f32.partialorder %v2958_v55, 0.5 }
 0x503   : > { %1474 = vmax.xlane.f32.xlu1 %v1473_v58  ;;  %v1787_v59 = vsel %vm1785_vm2, 1, %v2707_v0 }
 0x58e   : > { %v1472_v60 = vpop.xlane.xlu0 %1471 }
 0x58f   : > { %v1476_v61 = vsub.f32 %v1464_v53, %v1472_v60  ;;  %v2590_v53 = vld [vmem:[%s3046_s9] sm:$0xff]   ;;  %v2593_v60 = vld [vmem:[%s3046_s9 + $0x50] sm:$0xff]  }
 0x590   : > { %v1475_v62 = vpop.xlane.xlu1 %1474  ;;  %2310 = vmatpush3.bf16.msra.mxu1 %v2590_v53 }
 0x591   : > { %v1478_v63 = vmul.f32 1.442695, %v1476_v61  ;;  %v1477_v1 = vsub.f32 %v1467_v56, %v1475_v62  ;;  %v2960_v56 = vld [vmem:[%s500_s29 + $0x8] sm:$0xff]  ;;  %2311 = vmatprep.subr.bf16.mxu1 %v2591_v54  ;;  %v2594_v61 = vld [vmem:[%s3046_s9 + $0x10] sm:$0xff]   ;;  %v2595_v62 = vld [vmem:[%s3046_s9 + $0x58] sm:$0xff]  }
 0x592   : > { %vm1786_vm3 = vcmp.gt.f32.partialorder %v2960_v56, 0.5 }
 0x593   : > { %2613 = vpow2.f32 %v1478_v63  ;;  %v1480_v2 = vmul.f32 1.442695, %v1477_v1  ;;  %v1788_v58 = vsel %vm1786_vm3, 1, %v2707_v0  ;;  %v2596_v0 = vld [vmem:[%s3046_s9 + $0x18] sm:$0xff]   ;;  %v2597_v63 = vld [vmem:[%s3046_s9 + $0x60] sm:$0xff]  }
 0x594   : > { %2312 = vmatpush3.bf16.msra.mxu1 %v2592_v57  ;;  %v2598_v1 = vld [vmem:[%s3046_s9 + $0x20] sm:$0xff]  }
 0x595   : > { %2615 = vpow2.f32 %v1480_v2  ;;  %2313 = vmatprep.subr.bf16.mxu1 %v2593_v60  ;;  %v2599_v2 = vld [vmem:[%s3046_s9 + $0x68] sm:$0xff]  }
 0x598   : > { %2314 = vmatpush3.bf16.msra.mxu1 %v2594_v61 }
 0x599   : > { %2315 = vmatprep.subr.bf16.mxu1 %v2595_v62 }
 0x59c   : > { %2316 = vmatpush3.bf16.msra.mxu1 %v2596_v0 }
 0x59d   : > { %v2614_v3 = vpop.eup %2613  ;;  %2317 = vmatprep.subr.bf16.mxu1 %v2597_v63 }
 0x59e   : > { %v1482_v4 = vsel %vm556_vm0, %v2614_v3, 0.0 }
 0x59f   : > { %v2616_v5 = vpop.eup %2615  ;;  %1483 = vadd.xlane.f32.xlu0 %v1482_v4 }
 0x5a0   : > { %v1485_v6 = vsel %vm556_vm0, %v2616_v5, 0.0  ;;  %2318 = vmatpush3.bf16.msra.mxu1 %v2598_v1 }
 0x5a1   : > { %1486 = vadd.xlane.f32.xlu1 %v1485_v6  ;;  %2319 = vmatprep.subr.bf16.mxu1 %v2599_v2 }
 0x5b2   : > { %1793 = vperm.xlu1 %2392, %v1788_v58  }
 0x5b5   : > { %1790 = vperm.xlu0 %2391, %v1787_v59  }
 0x62c   : > { %v1484_v11 = vpop.xlane.xlu0 %1483 }
 0x62d   : > { %2617 = vrcp.f32 %v1484_v11 }
 0x62e   : > { %v1487_v12 = vpop.xlane.xlu1 %1486 }
 0x62f   : > { %2619 = vrcp.f32 %v1487_v12  ;;  %v2601_v12 = vld [vmem:[%s3046_s9 + $0x70] sm:$0xff]  }
 0x637   : > { %v2618_v13 = vpop.eup %2617 }
 0x638   : > { %v1490_v15 = vmul.f32 %v2618_v13, %v2614_v3  ;;  %v2600_v3 = vld [vmem:[%s3046_s9 + $0x28] sm:$0xff]   ;;  %v2602_v13 = vld [vmem:[%s3046_s9 + $0x30] sm:$0xff]  }
 0x639   : > { %v2620_v14 = vpop.eup %2619  ;;  %2320 = vmatpush3.bf16.msra.mxu1 %v2600_v3 }
 0x63a   : > { %v1491_v16 = vmul.f32 %v2620_v14, %v2616_v5  ;;  %2321 = vmatprep.subr.bf16.mxu1 %v2601_v12  ;;  %v2603_v14 = vld [vmem:[%s3046_s9 + $0x78] sm:$0xff]  }
 0x63c   : > { %v1492_v18 = vpack.c.bf16 %v1491_v16, %v1490_v15  ;;  %v2604_v15 = vld [vmem:[%s3046_s9 + $0x38] sm:$0xff]   ;;  %v1794_v16 = vpop.permute.xlu1 %1793 }
 0x63d   : > { %2322 = vmatpush3.bf16.msra.mxu1 %v2602_v13  ;;  %vm2299_vm5 = vcmp.ne.s32.totalorder %v1794_v16, 1 }
 0x63e   : > { %2352 = vmatmul.mubr.msk.bf16.vlgmr.msra.gmra.mrb[20].mxu0 %vm556_vm0, %v1492_v18  ;;  %2323 = vmatprep.subr.bf16.mxu1 %v2603_v14  ;;  %v1579_v18 = vrot.slane %v1570_v47, %v537_v10 }
 0x63f   : > { %1743 = vmatpush1.bf16.msra.mxu0 %v2541_v17 }
 0x640   : > { %1744 = vmatprep.subr.bf16.mxu0 %v2546_v19 }
 0x641   : > { %2324 = vmatpush3.bf16.msra.mxu1 %v2604_v15 }
 0x643   : > { %1745 = vmatpush1.bf16.msra.mxu0 %v2544_v20 }
 0x644   : > { %1746 = vmatprep.subr.bf16.mxu0 %v2549_v21 }
 0x647   : > { %1747 = vmatpush1.bf16.msra.mxu0 %v2547_v22 }
 0x648   : > { %1748 = vmatprep.subr.bf16.mxu0 %v2552_v23 }
 0x64b   : > { %1749 = vmatpush1.bf16.msra.mxu0 %v2550_v24 }
 0x64c   : > { %1750 = vmatprep.subr.bf16.mxu0 %v2555_v25 }
 0x64f   : > { %1751 = vmatpush1.bf16.msra.mxu0 %v2553_v26 }
 0x650   : > { %1752 = vmatprep.subr.bf16.mxu0 %v2558_v27 }
 0x653   : > { %1753 = vmatpush1.bf16.msra.mxu0 %v2556_v28 }
 0x654   : > { %1754 = vmatprep.subr.bf16.mxu0 %v2561_v29 }
 0x657   : > { %1755 = vmatpush1.bf16.msra.mxu0 %v2559_v30 }
 0x658   : > { %1756 = vmatprep.subr.bf16.mxu0 %v2564_v31 }
 0x65b   : > { %1757 = vmatpush1.bf16.msra.mxu0 %v2562_v32 }
 0x65c   : > { %1758 = vmatprep.subr.bf16.mxu0 %v2567_v33  ;;  %v2294_v33 = vld [vmem:[%s3048_s11] ss:$0 sm:$0xff] }
 0x65f   : > { %1759 = vmatpush1.bf16.msra.mxu0 %v2565_v34 }
 0x660   : > { %1760 = vmatprep.subr.bf16.mxu0 %v2570_v35 }
 0x663   : > { %1761 = vmatpush1.bf16.msra.mxu0 %v2568_v36 }
 0x664   : > { %1762 = vmatprep.subr.bf16.mxu0 %v2573_v37 }
 0x667   : > { %1763 = vmatpush1.bf16.msra.mxu0 %v2571_v38 }
 0x668   : > { %1764 = vmatprep.subr.bf16.mxu0 %v2576_v39 }
 0x66b   : > { %1765 = vmatpush1.bf16.msra.mxu0 %v2574_v40 }
 0x66c   : > { %1766 = vmatprep.subr.bf16.mxu0 %v2579_v41  ;;  %v1998_v41 = vstv %s1997_s26 }
 0x66f   : > { %1767 = vmatpush1.bf16.msra.mxu0 %v2577_v42 }
 0x670   : > { %1768 = vmatprep.subr.bf16.mxu0 %v2582_v43 }
 0x673   : > { %1769 = vmatpush1.bf16.msra.mxu0 %v2580_v44 }
 0x674   : > { %1770 = vmatprep.subr.bf16.mxu0 %v2585_v45 }
 0x677   : > { %1771 = vmatpush1.bf16.msra.mxu0 %v2583_v46 }
 0x678   : > { %1772 = vmatprep.subr.bf16.mxu0 %v2588_v48 }
 0x67b   : > { %1773 = vmatpush1.bf16.msra.mxu0 %v2586_v51 }
 0x711   : > { %v1530_v4 = vpop.f32.mrb[20].mxu0 }
 0x712   : > { %v2353_v5 = vpop.f32.mrb[21].mxu0 }
 0x713   : > { %v1533_v6 = vpop.f32.mrb[22].mxu0 }
 0x714   : > { %v1537_v9 = vpack.c.bf16 %v1533_v6, %v1530_v4  ;;  %v2354_v11 = vpop.f32.mrb[23].mxu0 }
 0x716   : > { %1774 = vmatprep.mubr.bf16.mxu0 %v1537_v9 }
 0x717   : > { %1775 = vmatmul.mubr.bf16.vlgmr.msra.gmra.mrb[24].mxu0 %v1428_v50  ;;  %v1791_v50 = vpop.permute.xlu0 %1790 }
 0x718   : > { %vm2300_vm4 = vcmp.ne.s32.totalorder %v1791_v50, 1 }
 0x719   : > { %vm2286_vm6 = vmpackc.low %vm2299_vm5, %vm2300_vm4 }
 0x7ea   : > { %v1776_v17 = vpop.f32.mrb[24].mxu0 }
 0x7eb   : > { %v1778_v19 = vpop.f32.mrb[25].mxu0  ;;  %v1777_v21 = vadd.f32 %v1776_v17, %v1575_v49 }
 0x7ec   : > { %v1780_v20 = vpop.f32.mrb[26].mxu0  ;;  %v1779_v24 = vadd.f32 %v1778_v19, %v1579_v18 }
 0x7ed   : > { %v1781_v22 = vadd.f32 %v1780_v20, %v1575_v49  ;;  %v1782_v23 = vpop.f32.mrb[27].mxu0 }
 0x7ee   : > { %v1783_v25 = vadd.f32 %v1782_v23, %v1579_v18 }
 0x7ef   : > { %v2292_v26 = vpack.c.bf16 %v1781_v22, %v1777_v21 }
 0x7f0   : > { %v2287_v27 = vpack.c.bf16 %v1783_v25, %v1779_v24 }
 0x7f2   : > { %2288 = vmatprep.mubr.msk.bf16.mxu1 %vm2286_vm6, %v2287_v27 }
 0x7f3   : > { %2293 = vmatmul.mubr.msk.bf16.vlgmr.msra.gmra.mrb[8].mxu1 %vm2286_vm6, %v2292_v26 }
 0x8c6   : > { %v2325_v8 = vpop.f32.mrb[8].mxu1 }
 0x8c7   : > { %v2326_v10 = vpop.f32.mrb[9].mxu1 }
 0x8c8   : > { %v2327_v28 = vadd.f32 %v2326_v10, %v2325_v8  ;;  %v2328_v29 = vpop.f32.mrb[10].mxu1 }
 0x8c9   : > { %v2329_v30 = vpop.f32.mrb[11].mxu1 }
 0x8ca   : > { %v1973_v31 = vadd.f32 %v2327_v28, %v2267_v7  ;;  %v2330_v32 = vadd.f32 %v2329_v30, %v2328_v29 }
 0x8cc   : > { %v1979_v34 = vmax.f32 %v1973_v31, 0.0  ;;  %v1976_v35 = vadd.f32 %v2330_v32, %v2267_v7 }
 0x8ce   : > { %v1980_v36 = vmax.f32 %v1976_v35, 0.0  ;;  %v1988_v37 = vmul.f32 %v2294_v33, %v1979_v34 }
 0x8d0   : > { %v1991_v38 = vsel %vm1990_vm7, %v1988_v37, 0.0  ;;  %v1989_v39 = vmul.f32 %v2294_v33, %v1980_v36 }
 0x8d1   : > { %1992 = vadd.xlane.f32.xlu1 %v1991_v38 }
 0x8d2   : > { %v1994_v40 = vsel %vm1990_vm7, %v1989_v39, 0.0 }
 0x8d3   : > { %1995 = vadd.xlane.f32.xlu0 %v1994_v40 }
 0x95e   : > { %v1993_v42 = vpop.xlane.xlu1 %1992 }
 0x95f   : > { %v1999_v43 = vadd.f32 %v1998_v41, %v1993_v42 }
 0x960   : > { %v1996_v44 = vpop.xlane.xlu0 %1995 }
 0x961   : > { %v2295_v45 = vmul.f32 -1.442695, %v1999_v43  ;;  %v2000_v46 = vadd.f32 %v1998_v41, %v1996_v44 }
 0x963   : > { %2621 = vpow2.f32 %v2295_v45  ;;  %v2296_v48 = vmul.f32 -1.442695, %v2000_v46 }
 0x965   : > { %2623 = vpow2.f32 %v2296_v48 }
 0x96d   : > { %v2622_v51 = vpop.eup %2621 }
 0x96e   : > { %v2007_v52 = vadd.f32 1.0, %v2622_v51 }
 0x96f   : > { %v2624_v53 = vpop.eup %2623 }
 0x970   : > { %2625 = vrcp.f32 %v2007_v52  ;;  %v2008_v54 = vadd.f32 1.0, %v2624_v53 }
 0x972   : > { %2627 = vrcp.f32 %v2008_v54 }
 0x97a   : > { %v2626_v57 = vpop.eup %2625 }
 0x97b   : > { %v2013_v59 = vsel %vm1785_vm2, 0.0, %v2626_v57 }
 0x97c   : > { %v2628_v58 = vpop.eup %2627  ;;  %2016 = vst.msk [vmem:[%s509_s15] sm:$0xff] %vm2015_vm8, %v2013_v59 }
 0x97d   : > { %v2014_v60 = vsel %vm1786_vm3, 0.0, %v2628_v58 }
 0x97e   : > { %2017 = vst.msk [vmem:[%s509_s15 + $0x8] sm:$0xff] %vm2015_vm8, %v2014_v60 }
 0x97f PF: > { %s26_s27 = sadd.s32 1, %s2699_s27  }
 0x980   : > { %p23_p10 = scmp.ge.s32.totalorder %s26_s27, 4  }
 0x982   :  { %25 = sbr.rel (!%p23_p10) target bundleno = 4 (0x4), region = 117 }
 0x989   :  { %2040 = vsyncpa [#allocation4], 1 }
 0x98a   :  { %2042 = vsyncpa [#allocation4 + $0x1], 1 }
 0x98b   :  { %2043 = vsyncpa [#allocation6], 1 }

</bundles_post_ra>
